<compile_context>
chip_gen: v5e
topology: v5e:2x2
jax: 0.10.0
libtpu: 0.0.40
codegen_flags: <defaults>
</compile_context>

<pallas_src>
import functools

import jax
import jax.numpy as jnp
from jax.experimental import pallas as pl
from jax.experimental.pallas import tpu as pltpu


def _conv_poly_kernel(x_ref, w_ref, mask_ref, y_ref, stats_ref, taps_ref, *,
                      n_tiles, tile_l, cin_p, tap_offsets):
    """Polyphase 3x3-conv-over-2x-upsample as one matmul, plus BN partial stats.

    x_ref:     (1, Cin_p, Lp)       zero-padded, row-flattened input (resident across row tiles)
    w_ref:     (4*Cout, 9*Cin_p)    collapsed phase weights (resident)
    mask_ref:  (1, tile_l)          1.0 on valid columns, 0.0 on the 2 junk pad columns per row
    y_ref:     (1, 4*Cout, tile_l)  conv output tile, spatial (padded rows) on lanes
    stats_ref: (1, 1, 4*Cout, 2)    per-block [sum(y), sum(y*y)] over valid lanes
    taps_ref:  (9*Cin_p, tile_l)    VMEM scratch holding the tap matrix
    """
    base = 0 if n_tiles == 1 else pl.program_id(1) * tile_l
    # Build the tap matrix from 9 shifted views of the padded image (all in VMEM).
    for t, off in enumerate(tap_offsets):
        taps_ref[pl.ds(t * cin_p, cin_p), :] = x_ref[0, :, pl.ds(base + off, tile_l)]
    # One MXU pass: all 4 phases (M) x all 9 taps (K) at once; output lane-dense in spatial.
    y = jnp.dot(w_ref[...], taps_ref[...], preferred_element_type=jnp.float32)
    y_ref[0] = y
    # Per-channel partial BN statistics over the valid lanes of this block.
    yv = y * mask_ref[...]
    s1 = jnp.sum(yv, axis=1, keepdims=True)       # (4*Cout, 1)
    s2 = jnp.sum(yv * y, axis=1, keepdims=True)   # (4*Cout, 1)
    stats_ref[0, 0, :, 0:1] = s1
    stats_ref[0, 0, :, 1:2] = s2


def _bn_relu_kernel(y_ref, ss_ref, o_ref):
    # y_ref / o_ref: (1, 4*Cout, tile_l);  ss_ref: (2, 4*Cout, 1) = [scale, shift]
    o_ref[0] = jnp.maximum(y_ref[0] * ss_ref[0] + ss_ref[1], 0.0)


def _pick_row_tile(h, wp, cap_lanes=8192):
    """Largest row tile (divisor of h) whose flat width fits the lane budget; lane-aligned
    unless it covers the whole image."""
    if h * wp <= cap_lanes:
        return h
    for ht in range(h - 1, 0, -1):
        if h % ht == 0 and (ht * wp) % 128 == 0 and ht * wp <= cap_lanes:
            return ht
    return h


def _polyphase_weights(weight, cin_p):
    """(Cout, Cin, 3, 3) -> (4*Cout, 9*Cin_p) collapsed nearest-2x polyphase weights.

    Row    = (py*2 + px) * Cout + cout          (output phase, phase-major)
    Column = (ty*3 + tx) * Cin_p + cin          (original-resolution tap, ty/tx in 0..2)
    """
    cout, cin = weight.shape[0], weight.shape[1]
    p = jnp.arange(2)[:, None]
    k = jnp.arange(3)[None, :]
    tap = (p + k - 1) // 2 + 1                                     # (2, 3) -> tap index 0..2
    sel = (tap[:, :, None] == jnp.arange(3)[None, None, :]).astype(jnp.float32)   # (2, 3, 3)
    w_eff = jnp.einsum('aht,bwu,oihw->abotui', sel, sel, weight)   # (2, 2, Cout, 3, 3, Cin)
    w_eff = jnp.pad(w_eff, ((0, 0),) * 5 + ((0, cin_p - cin),))
    return w_eff.reshape(4 * cout, 9 * cin_p)


@jax.jit
def up_conv_forward(x, weight, bias, gamma, beta, eps=1e-5):
    """x: (N, Cin, H, W) NCHW.  Returns (N, Cout, 2H, 2W) NCHW, matching PyTorch up_conv."""
    del bias  # conv bias cancels exactly in training-mode BatchNorm (removed by y - mean)
    N, Cin, H, W = x.shape
    Cout = weight.shape[0]
    C4 = 4 * Cout                                  # 4 output phases x Cout channels
    Cin_p = ((Cin + 7) // 8) * 8                   # pad Cin to a sublane multiple

    Wp = W + 2                                     # padded row width (2 junk cols kept per row)
    Lp_raw = (H + 2) * Wp
    Lp = ((Lp_raw + 2 + 127) // 128) * 128         # lane-aligned flat input length
    HT = _pick_row_tile(H, Wp)
    TILE_L = HT * Wp
    n_tiles = H // HT
    Lout = n_tiles * TILE_L                        # == H * Wp

    # Zero pad (conv padding=1, at original resolution) + channel pad, flatten rows -> lanes.
    x_pad = jnp.pad(x, ((0, 0), (0, Cin_p - Cin), (1, 1), (1, 1)))
    x_flat = jnp.pad(x_pad.reshape(N, Cin_p, Lp_raw), ((0, 0), (0, 0), (0, Lp - Lp_raw)))

    w_all = _polyphase_weights(weight, Cin_p)      # (4*Cout, 9*Cin_p)
    tap_offsets = tuple(ty * Wp + tx for ty in range(3) for tx in range(3))
    mask = jnp.tile((jnp.arange(Wp) < W).astype(jnp.float32), H).reshape(1, Lout)

    kernel1 = functools.partial(_conv_poly_kernel, n_tiles=n_tiles, tile_l=TILE_L,
                                cin_p=Cin_p, tap_offsets=tap_offsets)

    # ---- Pallas kernel 1: polyphase conv (single matmul) + BN partial sums ----
    y_flat, stats = pl.pallas_call(
        kernel1,
        out_shape=(jax.ShapeDtypeStruct((N, C4, Lout), jnp.float32),
                   jax.ShapeDtypeStruct((N, n_tiles, C4, 2), jnp.float32)),
        grid=(N, n_tiles),
        in_specs=[
            pl.BlockSpec((1, Cin_p, Lp), lambda n, h: (n, 0, 0)),   # stays resident across h
            pl.BlockSpec((C4, 9 * Cin_p), lambda n, h: (0, 0)),     # weights resident
            pl.BlockSpec((1, TILE_L), lambda n, h: (0, h)),
        ],
        out_specs=(
            pl.BlockSpec((1, C4, TILE_L), lambda n, h: (n, 0, h)),
            pl.BlockSpec((1, 1, C4, 2), lambda n, h: (n, h, 0, 0)),
        ),
        scratch_shapes=[pltpu.VMEM((9 * Cin_p, TILE_L), jnp.float32)],
        compiler_params=pltpu.CompilerParams(
            dimension_semantics=("parallel", "arbitrary")),
    )(x_flat, w_all, mask)

    # Tiny per-channel BN finalization in glue (var = E[y^2] - E[y]^2, biased, training mode).
    count = jnp.float32(N * 4 * H * W)
    s = jnp.sum(stats, axis=(0, 1)).reshape(4, Cout, 2).sum(axis=0)   # (Cout, 2)
    mean = s[:, 0] / count
    var = jnp.maximum(s[:, 1] / count - mean * mean, 0.0)
    scale = gamma * jax.lax.rsqrt(var + eps)
    shift = beta - mean * scale
    ss = jnp.stack([jnp.tile(scale, 4), jnp.tile(shift, 4)], axis=0).reshape(2, C4, 1)

    # ---- Pallas kernel 2: fused BN-apply + ReLU, in place over y ----
    out_flat = pl.pallas_call(
        _bn_relu_kernel,
        out_shape=jax.ShapeDtypeStruct((N, C4, Lout), jnp.float32),
        grid=(N, n_tiles),
        in_specs=[
            pl.BlockSpec((1, C4, TILE_L), lambda n, h: (n, 0, h)),
            pl.BlockSpec((2, C4, 1), lambda n, h: (0, 0, 0)),
        ],
        out_specs=pl.BlockSpec((1, C4, TILE_L), lambda n, h: (n, 0, h)),
        input_output_aliases={0: 0},
        compiler_params=pltpu.CompilerParams(
            dimension_semantics=("parallel", "arbitrary")),
    )(y_flat, ss)

    # Drop the junk pad columns and interleave the 4 phases back to upsampled NCHW.
    out = out_flat.reshape(N, 2, 2, Cout, H, Wp)[..., :W]    # (N, py, px, Cout, H, W)
    out = jnp.transpose(out, (0, 3, 4, 1, 5, 2))             # (N, Cout, H, py, W, px)
    return out.reshape(N, Cout, 2 * H, 2 * W)


def _reference(x, weight, bias, gamma, beta, eps=1e-5):
    """Pure-JAX reference: nearest-2x upsample -> 3x3 conv (pad 1) -> train-mode BN -> ReLU."""
    x_up = jnp.repeat(jnp.repeat(x, 2, axis=2), 2, axis=3)
    y = jax.lax.conv_general_dilated(
        x_up, weight, window_strides=(1, 1), padding=((1, 1), (1, 1)),
        dimension_numbers=("NCHW", "OIHW", "NCHW"))
    y = y + bias[None, :, None, None]
    mean = y.mean(axis=(0, 2, 3), keepdims=True)
    var = ((y - mean) ** 2).mean(axis=(0, 2, 3), keepdims=True)
    y = (y - mean) / jnp.sqrt(var + eps)
    return jnp.maximum(gamma[None, :, None, None] * y + beta[None, :, None, None], 0.0)


if __name__ == "__main__":
    in_ch, out_ch = 4, 8
    N, H, W = 2, 16, 16

    key = jax.random.PRNGKey(0)
    kx, kw, kb = jax.random.split(key, 3)

    x = jax.random.normal(kx, (N, in_ch, H, W), dtype=jnp.float32)
    # Deterministic synthetic parameters (shapes match nn.Conv2d / nn.BatchNorm2d).
    weight = 0.1 * jax.random.normal(kw, (out_ch, in_ch, 3, 3), dtype=jnp.float32)
    bias = 0.1 * jax.random.normal(kb, (out_ch,), dtype=jnp.float32)
    gamma = jnp.ones((out_ch,), dtype=jnp.float32)   # PyTorch BN default init
    beta = jnp.zeros((out_ch,), dtype=jnp.float32)

    out = up_conv_forward(x, weight, bias, gamma, beta)
    jax.block_until_ready(out)
    assert out.shape == (N, out_ch, 2 * H, 2 * W)

    ref = _reference(x, weight, bias, gamma, beta)
    err = float(jnp.max(jnp.abs(out - ref)))
    assert err < 1e-3, f"max abs error vs reference: {err}"
    print("KERNEL_OK")
</pallas_src>

<mosaic_0001>
module attributes {stable_mosaic.version = 11 : i64} {
  func.func @_conv_poly_kernel(%arg0: i32, %arg1: i32, %arg2: memref<1x8x384xf32, #tpu.memory_space<vmem>>, %arg3: memref<32x72xf32, #tpu.memory_space<vmem>>, %arg4: memref<1x288xf32, #tpu.memory_space<vmem>>, %arg5: memref<1x32x288xf32, #tpu.memory_space<vmem>>, %arg6: memref<1x1x32x2xf32, #tpu.memory_space<vmem>>, %arg7: memref<72x288xf32, #tpu.memory_space<vmem>>) attributes {dimension_semantics = [#tpu.dimension_semantics<parallel>, #tpu.dimension_semantics<arbitrary>], iteration_bounds = array<i64: 2, 1>, scalar_prefetch = 0 : i64, scratch_operands = 1 : i64, tpu.core_type = #tpu.core_type<tc>, window_params = [{transform_indices = @transform_0, window_bounds = array<i64: 1, 8, 384>}, {pipeline_mode = #tpu.pipeline_mode<synchronous>, transform_indices = @transform_1, window_bounds = array<i64: 32, 72>}, {transform_indices = @transform_2, window_bounds = array<i64: 1, 288>}, {transform_indices = @transform_3, window_bounds = array<i64: 1, 32, 288>}, {transform_indices = @transform_4, window_bounds = array<i64: 1, 1, 32, 2>}]} {
    %c0 = arith.constant 0 : index
    %c0_0 = arith.constant 0 : index
    %c0_1 = arith.constant 0 : index
    %0 = vector.load %arg2[%c0, %c0_0, %c0_1] : memref<1x8x384xf32, #tpu.memory_space<vmem>>, vector<1x8x288xf32>
    %1 = vector.shape_cast %0 : vector<1x8x288xf32> to vector<8x288xf32>
    %c0_2 = arith.constant 0 : index
    %c0_3 = arith.constant 0 : index
    %2 = vector.load %arg7[%c0_2, %c0_3] : memref<72x288xf32, #tpu.memory_space<vmem>>, vector<8x288xf32>
    tpu.vector_store %arg7[%c0_2, %c0_3], %1 {strides = array<i32>} : memref<72x288xf32, #tpu.memory_space<vmem>>, vector<8x288xf32>,
    %c0_4 = arith.constant 0 : index
    %c0_5 = arith.constant 0 : index
    %c1 = arith.constant 1 : index
    %3 = vector.load %arg2[%c0_4, %c0_5, %c1] : memref<1x8x384xf32, #tpu.memory_space<vmem>>, vector<1x8x288xf32>
    %4 = vector.shape_cast %3 : vector<1x8x288xf32> to vector<8x288xf32>
    %c8 = arith.constant 8 : index
    %c0_6 = arith.constant 0 : index
    %5 = vector.load %arg7[%c8, %c0_6] : memref<72x288xf32, #tpu.memory_space<vmem>>, vector<8x288xf32>
    tpu.vector_store %arg7[%c8, %c0_6], %4 {strides = array<i32>} : memref<72x288xf32, #tpu.memory_space<vmem>>, vector<8x288xf32>,
    %c0_7 = arith.constant 0 : index
    %c0_8 = arith.constant 0 : index
    %c2 = arith.constant 2 : index
    %6 = vector.load %arg2[%c0_7, %c0_8, %c2] : memref<1x8x384xf32, #tpu.memory_space<vmem>>, vector<1x8x288xf32>
    %7 = vector.shape_cast %6 : vector<1x8x288xf32> to vector<8x288xf32>
    %c16 = arith.constant 16 : index
    %c0_9 = arith.constant 0 : index
    %8 = vector.load %arg7[%c16, %c0_9] : memref<72x288xf32, #tpu.memory_space<vmem>>, vector<8x288xf32>
    tpu.vector_store %arg7[%c16, %c0_9], %7 {strides = array<i32>} : memref<72x288xf32, #tpu.memory_space<vmem>>, vector<8x288xf32>,
    %c0_10 = arith.constant 0 : index
    %c0_11 = arith.constant 0 : index
    %c18 = arith.constant 18 : index
    %9 = vector.load %arg2[%c0_10, %c0_11, %c18] : memref<1x8x384xf32, #tpu.memory_space<vmem>>, vector<1x8x288xf32>
    %10 = vector.shape_cast %9 : vector<1x8x288xf32> to vector<8x288xf32>
    %c24 = arith.constant 24 : index
    %c0_12 = arith.constant 0 : index
    %11 = vector.load %arg7[%c24, %c0_12] : memref<72x288xf32, #tpu.memory_space<vmem>>, vector<8x288xf32>
    tpu.vector_store %arg7[%c24, %c0_12], %10 {strides = array<i32>} : memref<72x288xf32, #tpu.memory_space<vmem>>, vector<8x288xf32>,
    %c0_13 = arith.constant 0 : index
    %c0_14 = arith.constant 0 : index
    %c19 = arith.constant 19 : index
    %12 = vector.load %arg2[%c0_13, %c0_14, %c19] : memref<1x8x384xf32, #tpu.memory_space<vmem>>, vector<1x8x288xf32>
    %13 = vector.shape_cast %12 : vector<1x8x288xf32> to vector<8x288xf32>
    %c32 = arith.constant 32 : index
    %c0_15 = arith.constant 0 : index
    %14 = vector.load %arg7[%c32, %c0_15] : memref<72x288xf32, #tpu.memory_space<vmem>>, vector<8x288xf32>
    tpu.vector_store %arg7[%c32, %c0_15], %13 {strides = array<i32>} : memref<72x288xf32, #tpu.memory_space<vmem>>, vector<8x288xf32>,
    %c0_16 = arith.constant 0 : index
    %c0_17 = arith.constant 0 : index
    %c20 = arith.constant 20 : index
    %15 = vector.load %arg2[%c0_16, %c0_17, %c20] : memref<1x8x384xf32, #tpu.memory_space<vmem>>, vector<1x8x288xf32>
    %16 = vector.shape_cast %15 : vector<1x8x288xf32> to vector<8x288xf32>
    %c40 = arith.constant 40 : index
    %c0_18 = arith.constant 0 : index
    %17 = vector.load %arg7[%c40, %c0_18] : memref<72x288xf32, #tpu.memory_space<vmem>>, vector<8x288xf32>
    tpu.vector_store %arg7[%c40, %c0_18], %16 {strides = array<i32>} : memref<72x288xf32, #tpu.memory_space<vmem>>, vector<8x288xf32>,
    %c0_19 = arith.constant 0 : index
    %c0_20 = arith.constant 0 : index
    %c36 = arith.constant 36 : index
    %18 = vector.load %arg2[%c0_19, %c0_20, %c36] : memref<1x8x384xf32, #tpu.memory_space<vmem>>, vector<1x8x288xf32>
    %19 = vector.shape_cast %18 : vector<1x8x288xf32> to vector<8x288xf32>
    %c48 = arith.constant 48 : index
    %c0_21 = arith.constant 0 : index
    %20 = vector.load %arg7[%c48, %c0_21] : memref<72x288xf32, #tpu.memory_space<vmem>>, vector<8x288xf32>
    tpu.vector_store %arg7[%c48, %c0_21], %19 {strides = array<i32>} : memref<72x288xf32, #tpu.memory_space<vmem>>, vector<8x288xf32>,
    %c0_22 = arith.constant 0 : index
    %c0_23 = arith.constant 0 : index
    %c37 = arith.constant 37 : index
    %21 = vector.load %arg2[%c0_22, %c0_23, %c37] : memref<1x8x384xf32, #tpu.memory_space<vmem>>, vector<1x8x288xf32>
    %22 = vector.shape_cast %21 : vector<1x8x288xf32> to vector<8x288xf32>
    %c56 = arith.constant 56 : index
    %c0_24 = arith.constant 0 : index
    %23 = vector.load %arg7[%c56, %c0_24] : memref<72x288xf32, #tpu.memory_space<vmem>>, vector<8x288xf32>
    tpu.vector_store %arg7[%c56, %c0_24], %22 {strides = array<i32>} : memref<72x288xf32, #tpu.memory_space<vmem>>, vector<8x288xf32>,
    %c0_25 = arith.constant 0 : index
    %c0_26 = arith.constant 0 : index
    %c38 = arith.constant 38 : index
    %24 = vector.load %arg2[%c0_25, %c0_26, %c38] : memref<1x8x384xf32, #tpu.memory_space<vmem>>, vector<1x8x288xf32>
    %25 = vector.shape_cast %24 : vector<1x8x288xf32> to vector<8x288xf32>
    %c64 = arith.constant 64 : index
    %c0_27 = arith.constant 0 : index
    %26 = vector.load %arg7[%c64, %c0_27] : memref<72x288xf32, #tpu.memory_space<vmem>>, vector<8x288xf32>
    tpu.vector_store %arg7[%c64, %c0_27], %25 {strides = array<i32>} : memref<72x288xf32, #tpu.memory_space<vmem>>, vector<8x288xf32>,
    %c0_28 = arith.constant 0 : index
    %c0_29 = arith.constant 0 : index
    %27 = vector.load %arg3[%c0_28, %c0_29] : memref<32x72xf32, #tpu.memory_space<vmem>>, vector<32x72xf32>
    %c0_30 = arith.constant 0 : index
    %c0_31 = arith.constant 0 : index
    %28 = vector.load %arg7[%c0_30, %c0_31] : memref<72x288xf32, #tpu.memory_space<vmem>>, vector<72x288xf32>
    %cst = arith.constant dense<0.000000e+00> : vector<32x288xf32>
    %29 = tpu.matmul %27, %28, %cst {dimension_numbers = #tpu.dot_dimension_numbers<[1], [0], [0], [1], [0, 0, 1, 1], [], []>} : vector<32x72xf32>, vector<72x288xf32>, vector<32x288xf32> -> vector<32x288xf32>
    %c0_32 = arith.constant 0 : index
    %c0_33 = arith.constant 0 : index
    %c0_34 = arith.constant 0 : index
    %30 = vector.load %arg5[%c0_32, %c0_33, %c0_34] : memref<1x32x288xf32, #tpu.memory_space<vmem>>, vector<1x32x288xf32>
    %31 = vector.shape_cast %30 : vector<1x32x288xf32> to vector<32x288xf32>
    %32 = vector.shape_cast %29 : vector<32x288xf32> to vector<1x32x288xf32>
    tpu.vector_store %arg5[%c0_32, %c0_33, %c0_34], %32 {strides = array<i32>} : memref<1x32x288xf32, #tpu.memory_space<vmem>>, vector<1x32x288xf32>,
    %c0_35 = arith.constant 0 : index
    %c0_36 = arith.constant 0 : index
    %33 = vector.load %arg4[%c0_35, %c0_36] : memref<1x288xf32, #tpu.memory_space<vmem>>, vector<1x288xf32>
    %34 = vector.broadcast %33 : vector<1x288xf32> to vector<32x288xf32>
    %35 = arith.mulf %29, %34 : vector<32x288xf32>
    %cst_37 = arith.constant dense<0.000000e+00> : vector<32xf32>
    %36 = vector.multi_reduction <add>, %35, %cst_37 [1] : vector<32x288xf32> to vector<32xf32>
    %37 = vector.shape_cast %36 : vector<32xf32> to vector<32x1xf32>
    %38 = arith.mulf %35, %29 : vector<32x288xf32>
    %cst_38 = arith.constant dense<0.000000e+00> : vector<32xf32>
    %39 = vector.multi_reduction <add>, %38, %cst_38 [1] : vector<32x288xf32> to vector<32xf32>
    %40 = vector.shape_cast %39 : vector<32xf32> to vector<32x1xf32>
    %c0_39 = arith.constant 0 : index
    %c0_40 = arith.constant 0 : index
    %c0_41 = arith.constant 0 : index
    %c0_42 = arith.constant 0 : index
    %41 = vector.load %arg6[%c0_39, %c0_40, %c0_41, %c0_42] : memref<1x1x32x2xf32, #tpu.memory_space<vmem>>, vector<1x1x32x1xf32>
    %42 = vector.shape_cast %41 : vector<1x1x32x1xf32> to vector<32x1xf32>
    %43 = vector.shape_cast %37 : vector<32x1xf32> to vector<1x1x32x1xf32>
    tpu.vector_store %arg6[%c0_39, %c0_40, %c0_41, %c0_42], %43 {strides = array<i32>} : memref<1x1x32x2xf32, #tpu.memory_space<vmem>>, vector<1x1x32x1xf32>,
    %c0_43 = arith.constant 0 : index
    %c0_44 = arith.constant 0 : index
    %c0_45 = arith.constant 0 : index
    %c1_46 = arith.constant 1 : index
    %44 = vector.load %arg6[%c0_43, %c0_44, %c0_45, %c1_46] : memref<1x1x32x2xf32, #tpu.memory_space<vmem>>, vector<1x1x32x1xf32>
    %45 = vector.shape_cast %44 : vector<1x1x32x1xf32> to vector<32x1xf32>
    %46 = vector.shape_cast %40 : vector<32x1xf32> to vector<1x1x32x1xf32>
    tpu.vector_store %arg6[%c0_43, %c0_44, %c0_45, %c1_46], %46 {strides = array<i32>} : memref<1x1x32x2xf32, #tpu.memory_space<vmem>>, vector<1x1x32x1xf32>,
    return
  }
  func.func @transform_0(%arg0: i32, %arg1: i32) -> (i32, i32, i32) {
    %c0_i32 = arith.constant 0 : i32
    %c0_i32_0 = arith.constant 0 : i32
    %c0_i32_1 = arith.constant 0 : i32
    return %arg0, %c0_i32, %c0_i32_0 : i32, i32, i32
  }
  func.func @transform_1(%arg0: i32, %arg1: i32) -> (i32, i32) {
    %c0_i32 = arith.constant 0 : i32
    %c0_i32_0 = arith.constant 0 : i32
    %c0_i32_1 = arith.constant 0 : i32
    return %c0_i32, %c0_i32_0 : i32, i32
  }
  func.func @transform_2(%arg0: i32, %arg1: i32) -> (i32, i32) {
    %c0_i32 = arith.constant 0 : i32
    %c0_i32_0 = arith.constant 0 : i32
    return %c0_i32, %arg1 : i32, i32
  }
  func.func @transform_3(%arg0: i32, %arg1: i32) -> (i32, i32, i32) {
    %c0_i32 = arith.constant 0 : i32
    %c0_i32_0 = arith.constant 0 : i32
    return %arg0, %c0_i32, %arg1 : i32, i32, i32
  }
  func.func @transform_4(%arg0: i32, %arg1: i32) -> (i32, i32, i32, i32) {
    %c0_i32 = arith.constant 0 : i32
    %c0_i32_0 = arith.constant 0 : i32
    %c0_i32_1 = arith.constant 0 : i32
    return %arg0, %arg1, %c0_i32, %c0_i32_0 : i32, i32, i32, i32
  }
}

module attributes {stable_mosaic.version = 11 : i64} {
  func.func @_bn_relu_kernel(%arg0: i32, %arg1: i32, %arg2: memref<1x32x288xf32, #tpu.memory_space<vmem>>, %arg3: memref<2x32x1xf32, #tpu.memory_space<vmem>>, %arg4: memref<1x32x288xf32, #tpu.memory_space<vmem>>) attributes {dimension_semantics = [#tpu.dimension_semantics<parallel>, #tpu.dimension_semantics<arbitrary>], iteration_bounds = array<i64: 2, 1>, scalar_prefetch = 0 : i64, scratch_operands = 0 : i64, tpu.core_type = #tpu.core_type<tc>, window_params = [{transform_indices = @transform_0, window_bounds = array<i64: 1, 32, 288>}, {pipeline_mode = #tpu.pipeline_mode<synchronous>, transform_indices = @transform_1, window_bounds = array<i64: 2, 32, 1>}, {transform_indices = @transform_2, window_bounds = array<i64: 1, 32, 288>}]} {
    %c0 = arith.constant 0 : index
    %c0_0 = arith.constant 0 : index
    %c0_1 = arith.constant 0 : index
    %0 = vector.load %arg2[%c0, %c0_0, %c0_1] : memref<1x32x288xf32, #tpu.memory_space<vmem>>, vector<1x32x288xf32>
    %1 = vector.shape_cast %0 : vector<1x32x288xf32> to vector<32x288xf32>
    %c0_2 = arith.constant 0 : index
    %c0_3 = arith.constant 0 : index
    %c0_4 = arith.constant 0 : index
    %2 = vector.load %arg3[%c0_2, %c0_3, %c0_4] : memref<2x32x1xf32, #tpu.memory_space<vmem>>, vector<1x32x1xf32>
    %3 = vector.shape_cast %2 : vector<1x32x1xf32> to vector<32x1xf32>
    %4 = vector.broadcast %3 : vector<32x1xf32> to vector<32x288xf32>
    %5 = arith.mulf %1, %4 : vector<32x288xf32>
    %c1 = arith.constant 1 : index
    %c0_5 = arith.constant 0 : index
    %c0_6 = arith.constant 0 : index
    %6 = vector.load %arg3[%c1, %c0_5, %c0_6] : memref<2x32x1xf32, #tpu.memory_space<vmem>>, vector<1x32x1xf32>
    %7 = vector.shape_cast %6 : vector<1x32x1xf32> to vector<32x1xf32>
    %8 = vector.broadcast %7 : vector<32x1xf32> to vector<32x288xf32>
    %9 = arith.addf %5, %8 : vector<32x288xf32>
    %cst = arith.constant 0.000000e+00 : f32
    %10 = vector.broadcast %cst : f32 to vector<32x288xf32>
    %11 = arith.maximumf %9, %10 : vector<32x288xf32>
    %c0_7 = arith.constant 0 : index
    %c0_8 = arith.constant 0 : index
    %c0_9 = arith.constant 0 : index
    %12 = vector.load %arg4[%c0_7, %c0_8, %c0_9] : memref<1x32x288xf32, #tpu.memory_space<vmem>>, vector<1x32x288xf32>
    %13 = vector.shape_cast %12 : vector<1x32x288xf32> to vector<32x288xf32>
    %14 = vector.shape_cast %11 : vector<32x288xf32> to vector<1x32x288xf32>
    tpu.vector_store %arg4[%c0_7, %c0_8, %c0_9], %14 {strides = array<i32>} : memref<1x32x288xf32, #tpu.memory_space<vmem>>, vector<1x32x288xf32>,
    return
  }
  func.func @transform_0(%arg0: i32, %arg1: i32) -> (i32, i32, i32) {
    %c0_i32 = arith.constant 0 : i32
    %c0_i32_0 = arith.constant 0 : i32
    return %arg0, %c0_i32, %arg1 : i32, i32, i32
  }
  func.func @transform_1(%arg0: i32, %arg1: i32) -> (i32, i32, i32) {
    %c0_i32 = arith.constant 0 : i32
    %c0_i32_0 = arith.constant 0 : i32
    %c0_i32_1 = arith.constant 0 : i32
    %c0_i32_2 = arith.constant 0 : i32
    return %c0_i32, %c0_i32_0, %c0_i32_1 : i32, i32, i32
  }
  func.func @transform_2(%arg0: i32, %arg1: i32) -> (i32, i32, i32) {
    %c0_i32 = arith.constant 0 : i32
    %c0_i32_0 = arith.constant 0 : i32
    return %arg0, %c0_i32, %arg1 : i32, i32, i32
  }
}

</mosaic_0001>

<bundles_post_ra>
// kernel: tile.18
= control target key start
LH: loop header
LB: loop body
LE: loop exit
PB: predicated region body
PF: predicated region fallthrough
CT: control target
= control target key end

     0   :  { %s28_s0 = inlined_call_operand.vmem [shape: f32[18], index: 0, kind: input, shape index: {}]   ;;  %s29_s1 = inlined_call_operand.vmem [shape: f32[16,18], index: 1, kind: output, shape index: {}]  }
   0x1   :  { %v4_v0 = vld [vmem:[%s28_s0] ss:$0 sm:$0xff] }
   0x2   :  { %5 = vst [vmem:[%s29_s1] sm:$0xff] %v4_v0 }
   0x3   :  { %8 = vst [vmem:[%s29_s1 + $0x8] sm:$0xff] %v4_v0 }

// kernel: tile.19
= control target key start
LH: loop header
LB: loop body
LE: loop exit
PB: predicated region body
PF: predicated region fallthrough
CT: control target
= control target key end

     0   :  { %vm9_vm0 = vcmask 15360   ;;  %s169_s10 = smov 108   ;;  %s170_s13 = smov 126   ;;  %vm22_vm1 = vcmask 31744   ;;  %vm3_vm2 = vcmask 146432   ;;  %vm13_vm3 = vcmask 130048   ;;  %s257_s0 = inlined_call_operand.vmem [shape: f32[16,18], index: 0, kind: input, shape index: {}]   ;;  %s258_s1 = inlined_call_operand.vmem [shape: f32[1,288], index: 1, kind: output, shape index: {}]  }
   0x1   :  { %v139_v0 = vld [vmem:[%s257_s0 + $0x6] sm:$0x1]   ;;  %v135_v1 = vld [vmem:[%s257_s0 + $0x7] sm:$0x1]   ;;  %v141_v4 = vld [vmem:[%s257_s0 + $0x5] sm:$0x1]  }
   0x2   :  { %34 = vrot.lane.b32.xlu1 %v139_v0, %s169_s10  ;;  %v136_v2 = vld [vmem:[%s257_s0 + $0x7] sm:$0x1]   ;;  %v137_v5 = vld [vmem:[%s257_s0 + $0xe] sm:$0x1]   ;;  %s171_s20 = smov 90   ;;  %s172_s23 = smov 106  }
   0x3   :  { %v10_v3 = vsel %vm9_vm0, %v136_v2, %v135_v1  ;;  %v138_v6 = vld [vmem:[%s257_s0 + $0xe] sm:$0x1]   ;;  %47 = vrot.lane.b32.xlu2 %v141_v4, %s171_s20  ;;  %v140_v7 = vld [vmem:[%s257_s0 + $0xd] sm:$0x1]   ;;  %v142_v9 = vld [vmem:[%s257_s0 + $0xc] sm:$0x1]  }
   0x4   :  { %11 = vrot.lane.b32.xlu0 %v10_v3, %s170_s13  ;;  %v23_v8 = vsel %vm22_vm1, %v138_v6, %v137_v5  ;;  %s173_s26 = smov 124   ;;  %s174_s27 = smov 88   ;;  %v144_v10 = vld [vmem:[%s257_s0 + $0xb] sm:$0x1]   ;;  %v143_v11 = vld [vmem:[%s257_s0 + $0x4] sm:$0x1]  }
   0x5   :  { %s175_s3 = smov 70   ;;  %v145_v12 = vld [vmem:[%s257_s0 + $0x3] sm:$0x1]   ;;  %s176_s6 = smov 72   ;;  %v147_v13 = vld [vmem:[%s257_s0 + $0x2] sm:$0x1]  }
   0x6   :  { %s177_s7 = smov 54   ;;  %v146_v14 = vld [vmem:[%s257_s0 + $0xa] sm:$0x1]   ;;  %s178_s12 = smov 36   ;;  %v148_v15 = vld [vmem:[%s257_s0 + $0x9] sm:$0x1]  }
   0x7   :  { %s179_s15 = smov 52   ;;  %s180_s16 = smov 34   ;;  %v150_v16 = vld [vmem:[%s257_s0 + $0x8] sm:$0x1]   ;;  %v149_v17 = vld [vmem:[%s257_s0 + $0x1] sm:$0x1]  }
   0x8   :  { %s181_s21 = smov 16   ;;  %v151_v18 = vld [vmem:[%s257_s0 + $0xf] sm:$0x1]   ;;  %s182_s24 = smov 18   ;;  %v2_v19 = vld [vmem:[%s257_s0] sm:$0x1]  }
   0x9   :  { %s183_s25 = smov 14   ;;  %4 = vst.msk [vmem:[#allocation0] sm:$0x1] %vm3_vm2, %v2_v19   ;;  %vm16_vm4 = vcmask 1048560   ;;  %vm36_vm5 = vcmask 1032032   ;;  %vm49_vm6 = vcmask 884432  }
   0xa   :  { %40 = vrot.lane.b32.xlu1 %v140_v7, %s172_s23  ;;  %vm26_vm7 = vcmask 113664   ;;  %vm29_vm8 = vcmask 1048544   ;;  %vm42_vm9 = vcmask 1015632   ;;  %vm55_vm10 = vcmask 868032  }
   0xb   :  { %53 = vrot.lane.b32.xlu2 %v142_v9, %s174_s27  ;;  %vm114_vm11 = vcmask 261232   ;;  %vm68_vm12 = vcmask 720432   ;;  %vm62_vm13 = vcmask 736832   ;;  %vm75_vm14 = vcmask 589232  }
   0xc   :  { %24 = vrot.lane.b32.xlu0 %v23_v8, %s173_s26  ;;  %vm88_vm15 = vcmask 441632   ;;  %vm81_vm0 = vcmask 572832   ;;  %vm94_vm1 = vcmask 425232   ;;  %vm107_vm2 = vcmask 277632  }
  0x12   :  { %66 = vrot.lane.b32.xlu1 %v144_v10, %s175_s3 }
  0x13   :  { %73 = vrot.lane.b32.xlu2 %v145_v12, %s177_s7 }
  0x14   :  { %60 = vrot.lane.b32.xlu0 %v143_v11, %s176_s6 }
  0x1a   :  { %86 = vrot.lane.b32.xlu1 %v147_v13, %s178_s12 }
  0x1b   :  { %92 = vrot.lane.b32.xlu2 %v148_v15, %s180_s16 }
  0x1c   :  { %79 = vrot.lane.b32.xlu0 %v146_v14, %s179_s15 }
  0x22   :  { %105 = vrot.lane.b32.xlu1 %v150_v16, %s181_s21 }
  0x23   :  { %112 = vrot.lane.b32.xlu2 %v151_v18, %s183_s25 }
  0x24   :  { %99 = vrot.lane.b32.xlu0 %v149_v17, %s182_s24 }
  0x5d   :  { %v48_v20 = vpop.permute.xlu2 %47  }
  0x65   :  { %v54_v21 = vpop.permute.xlu2 %53  }
  0x6d   :  { %v74_v22 = vpop.permute.xlu2 %73  }
  0x74   :  { %v35_v23 = vpop.permute.xlu1 %34  }
  0x75   :  { %v93_v25 = vpop.permute.xlu2 %92  }
  0x76   :  { %v12_v24 = vpop.permute.xlu0 %11  }
  0x77   :  { %15 = vst.msk [vmem:[#allocation0 + $0x8] sm:$0x1] %vm13_vm3, %v12_v24   ;;  %vm101_vm3 = vcmask 294032  }
  0x78   :  { %17 = vst.msk [vmem:[#allocation0] sm:$0x1] %vm16_vm4, %v12_v24  }
  0x79   :  { %37 = vst.msk [vmem:[#allocation0] sm:$0x1] %vm36_vm5, %v35_v23  }
  0x7a   :  { %50 = vst.msk [vmem:[#allocation0] sm:$0x1] %vm49_vm6, %v48_v20  }
  0x7c   :  { %v41_v26 = vpop.permute.xlu1 %40  }
  0x7d   :  { %v113_v28 = vpop.permute.xlu2 %112  }
  0x7e   :  { %v25_v27 = vpop.permute.xlu0 %24  }
  0x7f   :  { %28 = vst.msk [vmem:[#allocation0 + $0x10] sm:$0x1] %vm26_vm7, %v25_v27  }
  0x80   :  { %31 = vst.msk [vmem:[#allocation0 + $0x8] sm:$0x1] %vm29_vm8, %v25_v27  }
  0x81   :  { %44 = vst.msk [vmem:[#allocation0 + $0x8] sm:$0x1] %vm42_vm9, %v41_v26  }
  0x82   :  { %57 = vst.msk [vmem:[#allocation0 + $0x8] sm:$0x1] %vm55_vm10, %v54_v21  }
  0x83   :  { %116 = vst.msk [vmem:[#allocation0 + $0x10] sm:$0x1] %vm114_vm11, %v113_v28  }
  0x84   :  { %v67_v29 = vpop.permute.xlu1 %66  }
  0x85   :  { %70 = vst.msk [vmem:[#allocation0 + $0x8] sm:$0x1] %vm68_vm12, %v67_v29  }
  0x86   :  { %v61_v30 = vpop.permute.xlu0 %60  }
  0x87   :  { %63 = vst.msk [vmem:[#allocation0] sm:$0x1] %vm62_vm13, %v61_v30  }
  0x88   :  { %76 = vst.msk [vmem:[#allocation0] sm:$0x1] %vm75_vm14, %v74_v22  }
  0x8a   :  { %v130_v31 = vld [vmem:[#allocation0 + $0x10] sm:$0x1] }
  0x8b   :  { %153 = vst [vmem:[%s258_s1 + $0x2] sm:$0x1] %v130_v31 }
  0x8c   :  { %v87_v32 = vpop.permute.xlu1 %86  }
  0x8d   :  { %89 = vst.msk [vmem:[#allocation0] sm:$0x1] %vm88_vm15, %v87_v32  }
  0x8e   :  { %v80_v33 = vpop.permute.xlu0 %79  }
  0x8f   :  { %83 = vst.msk [vmem:[#allocation0 + $0x8] sm:$0x1] %vm81_vm0, %v80_v33  }
  0x90   :  { %96 = vst.msk [vmem:[#allocation0 + $0x8] sm:$0x1] %vm94_vm1, %v93_v25  }
  0x94   :  { %v106_v34 = vpop.permute.xlu1 %105  }
  0x95   :  { %109 = vst.msk [vmem:[#allocation0 + $0x8] sm:$0x1] %vm107_vm2, %v106_v34  }
  0x96   :  { %v100_v35 = vpop.permute.xlu0 %99  }
  0x97   :  { %102 = vst.msk [vmem:[#allocation0] sm:$0x1] %vm101_vm3, %v100_v35  }
  0x9c   :  { %v124_v36 = vld [vmem:[#allocation0 + $0x8] sm:$0x1] }
  0x9d   :  { %152 = vst [vmem:[%s258_s1 + $0x1] sm:$0x1] %v124_v36 }
  0x9e   :  { %v119_v37 = vld [vmem:[#allocation0] sm:$0x1] }
  0x9f   :  { %122 = vst [vmem:[%s258_s1] sm:$0x1] %v119_v37 }

// kernel: tile.27
= control target key start
LH: loop header
LB: loop body
LE: loop exit
PB: predicated region body
PF: predicated region fallthrough
CT: control target
= control target key end

     0   :  { %s22_s0 = inlined_call_operand.vmem [shape: f32[8], index: 0, kind: input, shape index: {}]   ;;  %s23_s1 = inlined_call_operand.vmem [shape: f32[4,8], index: 1, kind: output, shape index: {}]  }
   0x1   :  { %v4_v0 = vld [vmem:[%s22_s0] ss:$0 sm:$0xff] }
   0x2   :  { %5 = vst [vmem:[%s23_s1] sm:$0xf] %v4_v0 }

// kernel: tile.29
= control target key start
LH: loop header
LB: loop body
LE: loop exit
PB: predicated region body
PF: predicated region fallthrough
CT: control target
= control target key end

     0   :  { %s37_s8 = smov 8   ;;  %s38_s9 = smov 16   ;;  %vm7_vm0 = vcmask 64512   ;;  %vm13_vm1 = vcmask 261312   ;;  %vm19_vm2 = vcmask 195712   ;;  %vm25_vm3 = vcmask 130112   ;;  %s55_s0 = inlined_call_operand.vmem [shape: f32[4,8], index: 0, kind: input, shape index: {}]   ;;  %s56_s1 = inlined_call_operand.vmem [shape: f32[1,32], index: 1, kind: output, shape index: {}]  }
   0x1   :  { %v4_v0 = vld [vmem:[%s55_s0] sm:$0xf]  ;;  %s36_s0 = smov 24  }
   0x2   :  { %5 = vst [vmem:[#allocation1] sm:$0xf] %v4_v0 }
   0x9   :  { %v10_v1 = vld [vmem:[#allocation1 + $0x3] sm:$0x1]   ;;  %v22_v2 = vld [vmem:[#allocation1 + $0x1] sm:$0x1]   ;;  %v16_v3 = vld [vmem:[#allocation1 + $0x2] sm:$0x1]  }
   0xa   :  { %11 = vrot.lane.b32.xlu0 %v10_v1, %s36_s0  ;;  %23 = vrot.lane.b32.xlu1 %v22_v2, %s37_s8  ;;  %v6_v4 = vld [vmem:[#allocation1] sm:$0x1]  }
   0xb   :  { %8 = vst.msk [vmem:[#allocation0] sm:$0x1] %vm7_vm0, %v6_v4  }
  0x12   :  { %17 = vrot.lane.b32.xlu0 %v16_v3, %s38_s9 }
  0x7c   :  { %v12_v5 = vpop.permute.xlu0 %11   ;;  %v24_v6 = vpop.permute.xlu1 %23  }
  0x7d   :  { %14 = vst.msk [vmem:[#allocation0] sm:$0x1] %vm13_vm1, %v12_v5  }
  0x84   :  { %v18_v7 = vpop.permute.xlu0 %17  }
  0x85   :  { %20 = vst.msk [vmem:[#allocation0] sm:$0x1] %vm19_vm2, %v18_v7  }
  0x86   :  { %26 = vst.msk [vmem:[#allocation0] sm:$0x1] %vm25_vm3, %v24_v6  }
  0x8d   :  { %v29_v8 = vld [vmem:[#allocation0] sm:$0x1] }
  0x8e   :  { %32 = vst [vmem:[%s56_s1] sm:$0x1] %v29_v8 }

// kernel: up_conv_forward.3
= control target key start
LH: loop header
LB: loop body
LE: loop exit
PB: predicated region body
PF: predicated region fallthrough
CT: control target
= control target key end

     0   :  { %s462_s9 = smov 0   ;;  %s464_s10 = smov 0   ;;  %s541_s0 = inlined_call_operand.vmem [shape: f32[2,32,288], index: 0, kind: input, shape index: {}, may-alias: {0,2}]   ;;  %s542_s1 = inlined_call_operand.vmem [shape: f32[2,32,1], index: 1, kind: input, shape index: {}]   ;;  %s543_s2 = inlined_call_operand.vmem [shape: f32[2,32,288], index: 2, kind: output, shape index: {}, may-alias: {0,2}]  }
   0x1   :  { %s466_s11 = smov 0  }
   0x2 LB: > { %s24_s12 = sadd.s32 1, %s440_s10  ;;  %p384_p0 = scmp.ge.s32.totalorder %s444_s11, 1  ;;  %s444_s11 = sphi %s466_s11, %s12_s11   ;;  %s440_s10 = sphi %s464_s10, %s545_s10   ;;  %s436_s9 = sphi %s462_s9, %s544_s9  }
   0x3   : > { %p26_p1 = scmp.ge.s32.totalorder %s24_s12, 2  ;;  %p133_p2 = scmp.lt.s32.totalorder %s444_s11, 3 }
   0x5   : > { %s547_s12 = smov (%p26_p1, %s24_s12), 0  ;;  %p134_p3 = pnand %p384_p0, %p133_p2 }
   0x6   : > { %p164_p4 = scmp.lt.s32.totalorder (!%p134_p3), %s436_s9, 1 }
   0x7   : > { %137 = sbr.rel (%p134_p3) target bundleno = 155 (0x9b), region = 28 }
   0xc   : > { %v197_v0 = vld [vmem:[%s542_s1 + $0x10] sm:$0xff]  ;;  %v195_v1 = vld [vmem:[%s542_s1] sm:$0xff]  ;;  %v446_v2 = vmov 0   ;;  %v198_v4 = vld [vmem:[%s542_s1 + $0x18] sm:$0xff]  ;;  %s549_s9 = smov (!%p164_p4, %s436_s9), 1  ;;  %vm282_vm0 = vcmask 261120  }
   0xd   : > { %420 = vset.pattern.permute.xlu1 %v446_v2  ;;  %419 = vset.pattern.permute.xlu0 %v446_v2  ;;  %v387_v3 = vld [vmem:[%s542_s1 + $0x20] sm:$0xff]  ;;  %v196_v5 = vld [vmem:[%s542_s1 + $0x8] sm:$0xff]  ;;  %v390_v7 = vld [vmem:[%s542_s1 + $0x38] sm:$0xff]  ;;  %s393_s29 = smul.u32 96, %s549_s9 }
   0xe   : > { %211 = vperm.xlu1 %420, %v197_v0   ;;  %201 = vperm.xlu0 %419, %v195_v1   ;;  %v388_v6 = vld [vmem:[%s542_s1 + $0x28] sm:$0xff]  ;;  %v389_v8 = vld [vmem:[%s542_s1 + $0x30] sm:$0xff] }
   0xf   : > { %421 = vset.pattern.permute.xlu2 %v446_v2  ;;  %s171_s4 = scalar_lea.vmem %s541_s0, %s393_s29  ;;  %s514_s7 = scalar_lea.vmem %s543_s2, %s393_s29 }
  0x10   : > { %238 = vperm.xlu2 %421, %v387_v3   ;;  %v183_v9 = vld [vmem:[%s171_s4] sm:$0xff]  ;;  %v184_v11 = vld [vmem:[%s171_s4 + $0x8] sm:$0xff]  ;;  %v185_v12 = vld [vmem:[%s171_s4 + $0x10] sm:$0xff] }
  0x11   : > { %v192_v19 = vld [vmem:[%s171_s4 + $0x48] sm:$0xff]  ;;  %v193_v20 = vld [vmem:[%s171_s4 + $0x50] sm:$0xff]  ;;  %v194_v21 = vld [vmem:[%s171_s4 + $0x58] sm:$0xff] }
  0x12   : > { %v186_v24 = vld [vmem:[%s171_s4 + $0x18] sm:$0xff]  ;;  %v187_v25 = vld [vmem:[%s171_s4 + $0x20] sm:$0xff]  ;;  %v188_v26 = vld [vmem:[%s171_s4 + $0x28] sm:$0xff] }
  0x13   : > { %v189_v28 = vld [vmem:[%s171_s4 + $0x30] sm:$0xff]  ;;  %v190_v29 = vld [vmem:[%s171_s4 + $0x38] sm:$0xff]  ;;  %v191_v30 = vld [vmem:[%s171_s4 + $0x40] sm:$0xff] }
  0x16   : > { %216 = vperm.xlu1 %420, %v198_v4   ;;  %206 = vperm.xlu0 %419, %v196_v5  }
  0x18   : > { %243 = vperm.xlu2 %421, %v388_v6  }
  0x1e   : > { %253 = vperm.xlu1 %420, %v390_v7   ;;  %248 = vperm.xlu0 %419, %v389_v8  }
  0x6a   : > { %v239_v10 = vpop.permute.xlu2 %238 }
  0x72   : > { %v244_v36 = vpop.permute.xlu2 %243 }
  0x80   : > { %v212_v13 = vpop.permute.xlu1 %211  ;;  %v202_v14 = vpop.permute.xlu0 %201 }
  0x81   : > { %v219_v15 = vmul.f32 %v202_v14, %v183_v9  ;;  %v220_v16 = vmul.f32 %v202_v14, %v184_v11  ;;  %v221_v17 = vmul.f32 %v202_v14, %v185_v12  ;;  %v225_v45 = vmul.f32 %v212_v13, %v189_v28 }
  0x82   : > { %v226_v49 = vmul.f32 %v212_v13, %v190_v29  ;;  %v227_v50 = vmul.f32 %v212_v13, %v191_v30 }
  0x83   : > { %v256_v18 = vadd.f32 %v239_v10, %v219_v15  ;;  %v257_v22 = vadd.f32 %v239_v10, %v220_v16  ;;  %v258_v23 = vadd.f32 %v239_v10, %v221_v17 }
  0x85   : > { %v268_v27 = vmax.f32 %v256_v18, 0.0  ;;  %v269_v31 = vmax.f32 %v257_v22, 0.0  ;;  %v270_v32 = vmax.f32 %v258_v23, 0.0 }
  0x87   : > { %280 = vst [vmem:[%s514_s7] sm:$0xff] %v268_v27 }
  0x88   : > { %v217_v33 = vpop.permute.xlu1 %216  ;;  %v207_v34 = vpop.permute.xlu0 %206  ;;  %281 = vst [vmem:[%s514_s7 + $0x8] sm:$0xff] %v269_v31 }
  0x89   : > { %v222_v35 = vmul.f32 %v207_v34, %v186_v24  ;;  %283 = vst.msk [vmem:[%s514_s7 + $0x10] sm:$0xff] %vm282_vm0, %v270_v32  ;;  %v223_v37 = vmul.f32 %v207_v34, %v187_v25  ;;  %v224_v38 = vmul.f32 %v207_v34, %v188_v26  ;;  %v228_v46 = vmul.f32 %v217_v33, %v192_v19 }
  0x8a   : > { %v229_v47 = vmul.f32 %v217_v33, %v193_v20  ;;  %v230_v48 = vmul.f32 %v217_v33, %v194_v21 }
  0x8b   : > { %v259_v39 = vadd.f32 %v244_v36, %v222_v35  ;;  %v260_v40 = vadd.f32 %v244_v36, %v223_v37  ;;  %v261_v41 = vadd.f32 %v244_v36, %v224_v38 }
  0x8d   : > { %v271_v42 = vmax.f32 %v259_v39, 0.0  ;;  %v272_v43 = vmax.f32 %v260_v40, 0.0  ;;  %v273_v44 = vmax.f32 %v261_v41, 0.0 }
  0x8f   : > { %284 = vst [vmem:[%s514_s7 + $0x18] sm:$0xff] %v271_v42 }
  0x90   : > { %285 = vst [vmem:[%s514_s7 + $0x20] sm:$0xff] %v272_v43  ;;  %v254_v51 = vpop.permute.xlu1 %253  ;;  %v249_v52 = vpop.permute.xlu0 %248 }
  0x91   : > { %286 = vst.msk [vmem:[%s514_s7 + $0x28] sm:$0xff] %vm282_vm0, %v273_v44  ;;  %v265_v53 = vadd.f32 %v254_v51, %v228_v46  ;;  %v266_v54 = vadd.f32 %v254_v51, %v229_v47  ;;  %v267_v55 = vadd.f32 %v254_v51, %v230_v48  ;;  %v262_v56 = vadd.f32 %v249_v52, %v225_v45 }
  0x92   : > { %v263_v57 = vadd.f32 %v249_v52, %v226_v49  ;;  %v264_v58 = vadd.f32 %v249_v52, %v227_v50 }
  0x93   : > { %v277_v59 = vmax.f32 %v265_v53, 0.0  ;;  %v278_v60 = vmax.f32 %v266_v54, 0.0  ;;  %v279_v61 = vmax.f32 %v267_v55, 0.0  ;;  %v274_v62 = vmax.f32 %v262_v56, 0.0 }
  0x94   : > { %v275_v63 = vmax.f32 %v263_v57, 0.0  ;;  %v276_v0 = vmax.f32 %v264_v58, 0.0 }
  0x95   : > { %290 = vst [vmem:[%s514_s7 + $0x48] sm:$0xff] %v277_v59 }
  0x96   : > { %291 = vst [vmem:[%s514_s7 + $0x50] sm:$0xff] %v278_v60 }
  0x97   : > { %292 = vst.msk [vmem:[%s514_s7 + $0x58] sm:$0xff] %vm282_vm0, %v279_v61 }
  0x98   : > { %287 = vst [vmem:[%s514_s7 + $0x30] sm:$0xff] %v274_v62 }
  0x99   : > { %288 = vst [vmem:[%s514_s7 + $0x38] sm:$0xff] %v275_v63 }
  0x9a   : > { %289 = vst.msk [vmem:[%s514_s7 + $0x40] sm:$0xff] %vm282_vm0, %v276_v0 }
  0x9b PF: > { %s12_s11 = sadd.s32 1, %s444_s11   ;;  %s544_s9 = smov %s440_s10 }
  0x9c   : > { %p9_p5 = scmp.ge.s32.totalorder %s12_s11, 4   ;;  %s545_s10 = smov %s547_s12 }
  0x9e   :  { %11 = sbr.rel (!%p9_p5) target bundleno = 2 (0x2), region = 59 }

// kernel: up_conv_forward.2
= control target key start
LH: loop header
LB: loop body
LE: loop exit
PB: predicated region body
PF: predicated region fallthrough
CT: control target
= control target key end

     0   :  { %s934_s15 = smov 0   ;;  %s936_s16 = smov 0   ;;  %s1072_s0 = inlined_call_operand.vmem [shape: f32[2,8,384], index: 0, kind: input, shape index: {}]   ;;  %s1073_s1 = inlined_call_operand.vmem [shape: f32[32,72], index: 1, kind: input, shape index: {}]   ;;  %s1074_s2 = inlined_call_operand.vmem [shape: f32[1,288], index: 2, kind: input, shape index: {}]   ;;  %s1075_s3 = inlined_call_operand.vmem [shape: f32[2,32,288], index: 3, kind: output, shape index: {0}]   ;;  %s1076_s4 = inlined_call_operand.vmem [shape: f32[2,1,32,2], index: 4, kind: output, shape index: {1}]  }
   0x1   :  { %s938_s17 = smov 0  }
   0x2 LB: > { %s27_s18 = sadd.s32 1, %s895_s16  ;;  %p814_p0 = scmp.ge.s32.totalorder %s899_s17, 1  ;;  %s899_s17 = sphi %s938_s17, %s15_s17   ;;  %s895_s16 = sphi %s936_s16, %s1078_s16   ;;  %s891_s15 = sphi %s934_s15, %s1077_s15  }
   0x3   : > { %p29_p1 = scmp.ge.s32.totalorder %s27_s18, 2  ;;  %p191_p2 = scmp.lt.s32.totalorder %s899_s17, 3 }
   0x5   : > { %s1080_s18 = smov (%p29_p1, %s27_s18), 0  ;;  %p192_p3 = pnand %p814_p0, %p191_p2 }
   0x6   : > { %p234_p4 = scmp.lt.s32.totalorder (!%p192_p3), %s891_s15, 1  ;;  %s901_s23 = smov (!%p192_p3), 90  }
   0x7   : > { %195 = sbr.rel (%p192_p3) target bundleno = 474 (0x1da), region = 32  ;;  %s902_s24 = smov (!%p192_p3), 92  }
   0x8   : > { %s903_s25 = smov (!%p192_p3), 108   ;;  %s904_s26 = smov (!%p192_p3), 91  }
   0x9   : > { %s905_s27 = smov (!%p192_p3), 109   ;;  %s906_s28 = smov (!%p192_p3), 110  }
   0xa   : > { %s907_s29 = smov (!%p192_p3), 126   ;;  %s908_s30 = smov (!%p192_p3), 127  }
   0xc   : > { %s1082_s15 = smov (!%p234_p4, %s891_s15), 1  ;;  %vm268_vm0 = vcmask 261120   ;;  %vm387_vm1 = vcmask 752640   ;;  %vm366_vm2 = vcmask 883712   ;;  %vm408_vm3 = vcmask 744448   ;;  %v438_v46 = vld [vmem:[%s1073_s1] sm:$0xff] }
   0xd   : > { %s843_s19 = smul.u32 24, %s1082_s15  ;;  %vm429_vm4 = vcmask 736256   ;;  %vm345_vm5 = vcmask 891904   ;;  %vm324_vm6 = vcmask 900096   ;;  %vm303_vm7 = vcmask 1031168   ;;  %v439_v53 = vld [vmem:[%s1073_s1 + $0x8] sm:$0xff] }
   0xe   : > { %vm469_vm8 = vcmask 588800   ;;  %vm282_vm9 = vcmask 1039360   ;;  %v440_v54 = vld [vmem:[%s1073_s1 + $0x10] sm:$0xff]  ;;  %v441_v55 = vld [vmem:[%s1073_s1 + $0x18] sm:$0xff]  ;;  %s844_s13 = smul.u32 96, %s1082_s15  ;;  %vm653_vm10 = vcmask 7168  }
   0xf   : > { %s238_s22 = scalar_lea.vmem %s1072_s0, %s843_s19  ;;  %v581_v56 = vld [vmem:[%s1074_s2] sm:$0x7]  ;;  %vm658_vm11 = vcmask 15368  }
  0x10   : > { %v419_v0 = vld [vmem:[%s238_s22 + $0x10] sm:$0xff]  ;;  %v958_v1 = vld [vmem:[%s238_s22 + $0x8] sm:$0xff]  ;;  %v960_v2 = vld [vmem:[%s238_s22] sm:$0xff]  ;;  %s1030_s20 = scalar_lea.vmem %s1075_s3, %s844_s13  ;;  %v584_v58 = vperm.slane %v581_v56, 1  ;;  %v583_v59 = vperm.slane %v581_v56, 0  ;;  %v585_v60 = vperm.slane %v581_v56, 2 }
  0x11   : > { %427 = vrot.lane.b32.xlu0 %v419_v0, %s901_s23  ;;  %385 = vrot.lane.b32.xlu1 %v419_v0, %s902_s24  ;;  %269 = vst.msk [vmem:[#allocation2 + $0x10] sm:$0xff] %vm268_vm0, %v419_v0 }
  0x12   : > { %364 = vrot.lane.b32.xlu2 %v419_v0, %s903_s25 }
  0x18   : > { %v444_v43 = vld [vmem:[#allocation2 + $0x10] sm:$0xff] }
  0x19   : > { %406 = vrot.lane.b32.xlu0 %v419_v0, %s904_s26  ;;  %425 = vrot.lane.b32.xlu1 %v958_v1, %s901_s23 }
  0x1a   : > { %404 = vrot.lane.b32.xlu2 %v958_v1, %s904_s26 }
  0x21   : > { %423 = vrot.lane.b32.xlu0 %v960_v2, %s901_s23  ;;  %343 = vrot.lane.b32.xlu1 %v419_v0, %s905_s27  ;;  %s833_s23 = sshll.u32 %s1082_s15, 5 }
  0x22   : > { %383 = vrot.lane.b32.xlu2 %v958_v1, %s902_s24 }
  0x29   : > { %402 = vrot.lane.b32.xlu0 %v960_v2, %s904_s26  ;;  %322 = vrot.lane.b32.xlu1 %v419_v0, %s906_s28  ;;  %s262_s26 = scalar_lea.vmem %s1076_s4, %s833_s23 }
  0x2a   : > { %362 = vrot.lane.b32.xlu2 %v958_v1, %s903_s25 }
  0x31   : > { %381 = vrot.lane.b32.xlu0 %v960_v2, %s902_s24  ;;  %301 = vrot.lane.b32.xlu1 %v419_v0, %s907_s29 }
  0x32   : > { %341 = vrot.lane.b32.xlu2 %v958_v1, %s905_s27 }
  0x39   : > { %360 = vrot.lane.b32.xlu0 %v960_v2, %s903_s25  ;;  %280 = vrot.lane.b32.xlu1 %v419_v0, %s908_s30 }
  0x3a   : > { %320 = vrot.lane.b32.xlu2 %v958_v1, %s906_s28 }
  0x41   : > { %339 = vrot.lane.b32.xlu0 %v960_v2, %s905_s27  ;;  %299 = vrot.lane.b32.xlu1 %v958_v1, %s907_s29 }
  0x42   : > { %318 = vrot.lane.b32.xlu2 %v960_v2, %s906_s28 }
  0x49   : > { %297 = vrot.lane.b32.xlu1 %v960_v2, %s907_s29  ;;  %278 = vrot.lane.b32.xlu0 %v958_v1, %s908_s30 }
  0x4a   : > { %276 = vrot.lane.b32.xlu2 %v960_v2, %s908_s30 }
  0x6c   : > { %v365_v3 = vpop.permute.xlu2 %364 }
  0x6d   : > { %374 = vst.msk [vmem:[#allocation2 + $0x88] sm:$0xff] %vm268_vm0, %v365_v3 }
  0x74   : > { %v405_v4 = vpop.permute.xlu2 %404  ;;  %v459_v24 = vld [vmem:[#allocation2 + $0x88] sm:$0xff] }
  0x7c   : > { %v384_v5 = vpop.permute.xlu2 %383 }
  0x83   : > { %v428_v6 = vpop.permute.xlu0 %427  ;;  %v386_v7 = vpop.permute.xlu1 %385 }
  0x84   : > { %437 = vst.msk [vmem:[#allocation2 + $0xd0] sm:$0xff] %vm268_vm0, %v428_v6  ;;  %v389_v8 = vsel %vm387_vm1, %v384_v5, %v386_v7  ;;  %v363_v9 = vpop.permute.xlu2 %362 }
  0x85   : > { %v368_v10 = vsel %vm366_vm2, %v363_v9, %v365_v3  ;;  %395 = vst.msk [vmem:[#allocation2 + $0xa0] sm:$0xff] %vm268_vm0, %v386_v7 }
  0x8b   : > { %v407_v11 = vpop.permute.xlu0 %406  ;;  %v426_v12 = vpop.permute.xlu1 %425  ;;  %v468_v13 = vld [vmem:[#allocation2 + $0xd0] sm:$0xff] }
  0x8c   : > { %v410_v14 = vsel %vm408_vm3, %v405_v4, %v407_v11  ;;  %416 = vst.msk [vmem:[#allocation2 + $0xb8] sm:$0xff] %vm268_vm0, %v407_v11  ;;  %v431_v15 = vsel %vm429_vm4, %v426_v12, %v428_v6  ;;  %547 = vmatpush.msra.mxu2 %v468_v13  ;;  %v342_v16 = vpop.permute.xlu2 %341  ;;  %v462_v23 = vld [vmem:[#allocation2 + $0xa0] sm:$0xff] }
  0x8d   : > { %518 = vmatpush.msra.mxu1 %v431_v15 }
  0x8f   : > { %519 = vmatpush.msra.mxu1 %v410_v14 }
  0x91   : > { %520 = vmatpush.msra.mxu1 %v389_v8 }
  0x93   : > { %v424_v17 = vpop.permute.xlu0 %423  ;;  %v344_v18 = vpop.permute.xlu1 %343  ;;  %v465_v19 = vld [vmem:[#allocation2 + $0xb8] sm:$0xff]  ;;  %521 = vmatpush.msra.mxu1 %v368_v10 }
  0x94   : > { %v430_v20 = vsel %vm429_vm4, %v424_v17, %v426_v12  ;;  %353 = vst.msk [vmem:[#allocation2 + $0x70] sm:$0xff] %vm268_vm0, %v344_v18  ;;  %v347_v21 = vsel %vm345_vm5, %v342_v16, %v344_v18  ;;  %548 = vmatpush.msra.mxu2 %v465_v19  ;;  %v321_v22 = vpop.permute.xlu2 %320 }
  0x95   : > { %489 = vmatpush.msra.mxu0 %v430_v20  ;;  %834 = vmatpush.msra.mxu3 %v430_v20 }
  0x96   : > { %549 = vmatpush.msra.mxu2 %v462_v23  ;;  %522 = vmatpush.msra.mxu1 %v347_v21 }
  0x98   : > { %550 = vmatpush.msra.mxu2 %v459_v24 }
  0x9b   : > { %v403_v25 = vpop.permute.xlu0 %402  ;;  %v323_v26 = vpop.permute.xlu1 %322  ;;  %v456_v27 = vld [vmem:[#allocation2 + $0x70] sm:$0xff] }
  0x9c   : > { %v409_v28 = vsel %vm408_vm3, %v403_v25, %v405_v4  ;;  %332 = vst.msk [vmem:[#allocation2 + $0x58] sm:$0xff] %vm268_vm0, %v323_v26  ;;  %v326_v29 = vsel %vm324_vm6, %v321_v22, %v323_v26  ;;  %551 = vmatpush.msra.mxu2 %v456_v27  ;;  %v319_v30 = vpop.permute.xlu2 %318 }
  0x9d   : > { %490 = vmatpush.msra.mxu0 %v409_v28  ;;  %835 = vmatpush.msra.mxu3 %v409_v28  ;;  %v325_v31 = vsel %vm324_vm6, %v319_v30, %v321_v22 }
  0x9e   : > { %523 = vmatpush.msra.mxu1 %v326_v29 }
  0xa3   : > { %v382_v32 = vpop.permute.xlu0 %381  ;;  %v302_v33 = vpop.permute.xlu1 %301  ;;  %v453_v34 = vld [vmem:[#allocation2 + $0x58] sm:$0xff] }
  0xa4   : > { %v388_v35 = vsel %vm387_vm1, %v382_v32, %v384_v5  ;;  %311 = vst.msk [vmem:[#allocation2 + $0x40] sm:$0xff] %vm268_vm0, %v302_v33  ;;  %552 = vmatpush.msra.mxu2 %v453_v34  ;;  %v277_v47 = vpop.permute.xlu2 %276 }
  0xa5   : > { %491 = vmatpush.msra.mxu0 %v388_v35  ;;  %836 = vmatpush.msra.mxu3 %v388_v35 }
  0xab   : > { %v361_v36 = vpop.permute.xlu0 %360  ;;  %v281_v37 = vpop.permute.xlu1 %280  ;;  %v450_v38 = vld [vmem:[#allocation2 + $0x40] sm:$0xff] }
  0xac   : > { %v367_v39 = vsel %vm366_vm2, %v361_v36, %v363_v9  ;;  %290 = vst.msk [vmem:[#allocation2 + $0x28] sm:$0xff] %vm268_vm0, %v281_v37  ;;  %553 = vmatpush.msra.mxu2 %v450_v38 }
  0xad   : > { %492 = vmatpush.msra.mxu0 %v367_v39  ;;  %837 = vmatpush.msra.mxu3 %v367_v39 }
  0xb3   : > { %v340_v40 = vpop.permute.xlu0 %339  ;;  %v300_v41 = vpop.permute.xlu1 %299  ;;  %v447_v42 = vld [vmem:[#allocation2 + $0x28] sm:$0xff] }
  0xb4   : > { %v346_v44 = vsel %vm345_vm5, %v340_v40, %v342_v16  ;;  %v305_v45 = vsel %vm303_vm7, %v300_v41, %v302_v33  ;;  %554 = vmatpush.msra.mxu2 %v447_v42 }
  0xb5   : > { %493 = vmatpush.msra.mxu0 %v346_v44  ;;  %838 = vmatpush.msra.mxu3 %v346_v44 }
  0xb6   : > { %524 = vmatpush.msra.mxu1 %v305_v45  ;;  %555 = vmatpush.msra.mxu2 %v444_v43 }
  0xb7   : > { %494 = vmatpush.msra.mxu0 %v325_v31  ;;  %839 = vmatpush.msra.mxu3 %v325_v31 }
  0xb8   : > { %827 = vmatmul.msk.f32.vlgmr.msra.gmra.mxu2 %vm469_vm8, %v438_v46 }
  0xbb   : > { %v298_v48 = vpop.permute.xlu1 %297  ;;  %v279_v49 = vpop.permute.xlu0 %278 }
  0xbc   : > { %v304_v50 = vsel %vm303_vm7, %v298_v48, %v300_v41  ;;  %v284_v51 = vsel %vm282_vm9, %v279_v49, %v281_v37  ;;  %v283_v52 = vsel %vm282_vm9, %v277_v47, %v279_v49 }
  0xbd   : > { %495 = vmatpush.msra.mxu0 %v304_v50  ;;  %840 = vmatpush.msra.mxu3 %v304_v50 }
  0xbe   : > { %525 = vmatpush.msra.mxu1 %v284_v51 }
  0xbf   : > { %496 = vmatpush.msra.mxu0 %v283_v52  ;;  %841 = vmatpush.msra.mxu3 %v283_v52 }
  0xc0   : > { %526 = vmatpush.msra.mxu1 %v958_v1  ;;  %828 = vmatmul.msk.f32.gmra.mxu2 %vm469_vm8, %v439_v53 }
  0xc1   : > { %823 = vmatmul.msk.f32.vlgmr.msra.gmra.mxu1 %vm469_vm8, %v438_v46  ;;  %497 = vmatpush.msra.mxu0 %v960_v2 }
  0xc2   : > { %842 = vmatpush.msra.mxu3 %v960_v2  ;;  %819 = vmatmul.msk.f32.vlgmr.msra.gmra.mxu0 %vm469_vm8, %v438_v46 }
  0xc3   : > { %820 = vmatmul.msk.f32.vlgmr.msra.gmra.mxu3 %vm469_vm8, %v439_v53 }
  0xc8   : > { %829 = vmatmul.msk.f32.gmra.mxu2 %vm469_vm8, %v440_v54 }
  0xc9   : > { %824 = vmatmul.msk.f32.gmra.mxu1 %vm469_vm8, %v439_v53 }
  0xcb   : > { %821 = vmatmul.msk.f32.gmra.mxu3 %vm469_vm8, %v440_v54 }
  0xd0   : > { %830 = vmatmul.msk.f32.gmra.mxu2 %vm469_vm8, %v441_v55 }
  0xd1   : > { %825 = vmatmul.msk.f32.gmra.mxu1 %vm469_vm8, %v440_v54 }
  0xd3   : > { %822 = vmatmul.msk.f32.gmra.mxu3 %vm469_vm8, %v441_v55 }
  0xd9   : > { %826 = vmatmul.msk.f32.gmra.mxu1 %vm469_vm8, %v441_v55 }
 0x13b   : > { %v557_v57 = vpop.f32.mrf.mxu2 }
 0x13c   : > { %571 = vst.msk [vmem:[%s1030_s20 + $0x10] sm:$0xff] %vm268_vm0, %v557_v57  ;;  %v591_v1 = vmul.f32 %v585_v60, %v557_v57 }
 0x13e   : > { %v528_v61 = vpop.f32.mrf.mxu1  ;;  %v602_v4 = vsel %vm268_vm0, %v591_v1, 0.0  ;;  %v623_v11 = vmul.f32 %v591_v1, %v557_v57 }
 0x13f   : > { %570 = vst [vmem:[%s1030_s20 + $0x8] sm:$0xff] %v528_v61  ;;  %v499_v62 = vpop.f32.mrf.mxu0  ;;  %v590_v63 = vmul.f32 %v584_v58, %v528_v61 }
 0x140   : > { %569 = vst [vmem:[%s1030_s20] sm:$0xff] %v499_v62  ;;  %v589_v0 = vmul.f32 %v583_v59, %v499_v62  ;;  %v634_v21 = vsel %vm268_vm0, %v623_v11, 0.0 }
 0x141   : > { %v622_v7 = vmul.f32 %v590_v63, %v528_v61 }
 0x142   : > { %v601_v2 = vadd.f32 %v590_v63, %v589_v0  ;;  %v621_v5 = vmul.f32 %v589_v0, %v499_v62 }
 0x143   : > { %v560_v3 = vpop.f32.mrf.mxu2 }
 0x144   : > { %574 = vst.msk [vmem:[%s1030_s20 + $0x28] sm:$0xff] %vm268_vm0, %v560_v3  ;;  %v603_v6 = vadd.f32 %v602_v4, %v601_v2  ;;  %v594_v8 = vmul.f32 %v585_v60, %v560_v3  ;;  %v633_v15 = vadd.f32 %v622_v7, %v621_v5 }
 0x146   : > { %v502_v9 = vpop.f32.mrf.mxu3  ;;  %v531_v10 = vpop.f32.mrf.mxu1  ;;  %604 = vadd.xlane.f32.xlu0 %v603_v6  ;;  %v607_v14 = vsel %vm268_vm0, %v594_v8, 0.0  ;;  %v635_v22 = vadd.f32 %v634_v21, %v633_v15  ;;  %v626_v23 = vmul.f32 %v594_v8, %v560_v3 }
 0x147   : > { %572 = vst [vmem:[%s1030_s20 + $0x18] sm:$0xff] %v502_v9  ;;  %v592_v12 = vmul.f32 %v583_v59, %v502_v9  ;;  %v593_v13 = vmul.f32 %v584_v58, %v531_v10 }
 0x148   : > { %573 = vst [vmem:[%s1030_s20 + $0x20] sm:$0xff] %v531_v10  ;;  %v639_v32 = vsel %vm268_vm0, %v626_v23, 0.0 }
 0x149   : > { %v606_v16 = vadd.f32 %v593_v13, %v592_v12  ;;  %v624_v17 = vmul.f32 %v592_v12, %v502_v9  ;;  %v625_v18 = vmul.f32 %v593_v13, %v531_v10 }
 0x14b   : > { %v563_v19 = vpop.f32.mrf.mxu2  ;;  %v608_v20 = vadd.f32 %v607_v14, %v606_v16  ;;  %v638_v29 = vadd.f32 %v625_v18, %v624_v17 }
 0x14c   : > { %577 = vst.msk [vmem:[%s1030_s20 + $0x40] sm:$0xff] %vm268_vm0, %v563_v19  ;;  %v597_v24 = vmul.f32 %v585_v60, %v563_v19 }
 0x14d   : > { %609 = vadd.xlane.f32.xlu1 %v608_v20  ;;  %v640_v34 = vadd.f32 %v639_v32, %v638_v29 }
 0x14e   : > { %v505_v25 = vpop.f32.mrf.mxu3  ;;  %v534_v26 = vpop.f32.mrf.mxu1  ;;  %636 = vadd.xlane.f32.xlu0 %v635_v22  ;;  %v612_v30 = vsel %vm268_vm0, %v597_v24, 0.0  ;;  %v629_v52 = vmul.f32 %v597_v24, %v563_v19 }
 0x14f   : > { %575 = vst [vmem:[%s1030_s20 + $0x30] sm:$0xff] %v505_v25  ;;  %v595_v27 = vmul.f32 %v583_v59, %v505_v25  ;;  %v596_v28 = vmul.f32 %v584_v58, %v534_v26 }
 0x150   : > { %576 = vst [vmem:[%s1030_s20 + $0x38] sm:$0xff] %v534_v26  ;;  %v644_v54 = vsel %vm268_vm0, %v629_v52, 0.0 }
 0x151   : > { %v611_v31 = vadd.f32 %v596_v28, %v595_v27  ;;  %v627_v46 = vmul.f32 %v595_v27, %v505_v25  ;;  %v628_v47 = vmul.f32 %v596_v28, %v534_v26 }
 0x153   : > { %v566_v33 = vpop.f32.mrf.mxu2  ;;  %v613_v35 = vadd.f32 %v612_v30, %v611_v31  ;;  %v643_v53 = vadd.f32 %v628_v47, %v627_v46 }
 0x154   : > { %580 = vst.msk [vmem:[%s1030_s20 + $0x58] sm:$0xff] %vm268_vm0, %v566_v33  ;;  %v600_v36 = vmul.f32 %v585_v60, %v566_v33 }
 0x155   : > { %641 = vadd.xlane.f32.xlu1 %v640_v34  ;;  %614 = vadd.xlane.f32.xlu2 %v613_v35  ;;  %v645_v55 = vadd.f32 %v644_v54, %v643_v53 }
 0x156   : > { %v508_v37 = vpop.f32.mrf.mxu3  ;;  %v537_v38 = vpop.f32.mrf.mxu1  ;;  %v632_v41 = vmul.f32 %v600_v36, %v566_v33  ;;  %v617_v42 = vsel %vm268_vm0, %v600_v36, 0.0 }
 0x157   : > { %578 = vst [vmem:[%s1030_s20 + $0x48] sm:$0xff] %v508_v37  ;;  %v598_v39 = vmul.f32 %v583_v59, %v508_v37  ;;  %v599_v40 = vmul.f32 %v584_v58, %v537_v38 }
 0x158   : > { %579 = vst [vmem:[%s1030_s20 + $0x50] sm:$0xff] %v537_v38  ;;  %v649_v50 = vsel %vm268_vm0, %v632_v41, 0.0 }
 0x159   : > { %v630_v43 = vmul.f32 %v598_v39, %v508_v37  ;;  %v631_v44 = vmul.f32 %v599_v40, %v537_v38  ;;  %v616_v45 = vadd.f32 %v599_v40, %v598_v39 }
 0x15b   : > { %v618_v48 = vadd.f32 %v617_v42, %v616_v45  ;;  %v648_v49 = vadd.f32 %v631_v44, %v630_v43 }
 0x15d   : > { %619 = vadd.xlane.f32.xlu2 %v618_v48  ;;  %v650_v51 = vadd.f32 %v649_v50, %v648_v49 }
 0x15f   : > { %651 = vadd.xlane.f32.xlu0 %v650_v51 }
 0x165   : > { %646 = vadd.xlane.f32.xlu2 %v645_v55 }
 0x1b9   : > { %v605_v56 = vpop.xlane.xlu0 %604 }
 0x1ba   : > { %654 = vst.msk [vmem:[%s262_s26] sm:$0xff] %vm653_vm10, %v605_v56 }
 0x1c0   : > { %v610_v57 = vpop.xlane.xlu1 %609 }
 0x1c1   : > { %655 = vst.msk [vmem:[%s262_s26 + $0x8] sm:$0xff] %vm653_vm10, %v610_v57  ;;  %v637_v58 = vpop.xlane.xlu0 %636 }
 0x1c2   : > { %659 = vst.msk [vmem:[%s262_s26] sm:$0xff] %vm658_vm11, %v637_v58 }
 0x1c8   : > { %v642_v59 = vpop.xlane.xlu1 %641  ;;  %v615_v60 = vpop.xlane.xlu2 %614 }
 0x1c9   : > { %660 = vst.msk [vmem:[%s262_s26 + $0x8] sm:$0xff] %vm658_vm11, %v642_v59 }
 0x1ca   : > { %656 = vst.msk [vmem:[%s262_s26 + $0x10] sm:$0xff] %vm653_vm10, %v615_v60 }
 0x1d0   : > { %v620_v61 = vpop.xlane.xlu2 %619 }
 0x1d1   : > { %657 = vst.msk [vmem:[%s262_s26 + $0x18] sm:$0xff] %vm653_vm10, %v620_v61 }
 0x1d2   : > { %v652_v62 = vpop.xlane.xlu0 %651 }
 0x1d3   : > { %662 = vst.msk [vmem:[%s262_s26 + $0x18] sm:$0xff] %vm658_vm11, %v652_v62 }
 0x1d8   : > { %v647_v63 = vpop.xlane.xlu2 %646 }
 0x1d9   : > { %661 = vst.msk [vmem:[%s262_s26 + $0x10] sm:$0xff] %vm658_vm11, %v647_v63 }
 0x1da PF: > { %s15_s17 = sadd.s32 1, %s899_s17   ;;  %s1077_s15 = smov %s895_s16 }
 0x1db   : > { %p12_p5 = scmp.ge.s32.totalorder %s15_s17, 4   ;;  %s1078_s16 = smov %s1080_s18 }
 0x1dd   :  { %14 = sbr.rel (!%p12_p5) target bundleno = 2 (0x2), region = 77 }

</bundles_post_ra>
